<compile_context>
chip_gen: v7x
topology: tpu7x:2x2x1
jax: 0.10.0
libtpu: 0.0.40
codegen_flags: <defaults>
</compile_context>

<pallas_src>
import functools

import jax
import jax.numpy as jnp
import numpy as np
from jax.experimental import pallas as pl
from jax.experimental.pallas import tpu as pltpu

_LANE = 128
_SUBLANE = 8


def _vmem_budget():
    """(per-input-block budget bytes, scoped vmem limit bytes) from physical VMEM."""
    cap = 64 * 1024 * 1024  # conservative default (v7x per-core VMEM)
    try:
        info = pltpu.get_tpu_info()
        cap = int(getattr(info, "vmem_capacity_bytes", cap))
    except Exception:
        pass
    budget = min(8 * 1024 * 1024, max(4 * 1024 * 1024, cap // 16))
    limit = min(64 * 1024 * 1024, cap // 2)
    return budget, limit


def _pick_tile(n, bytes_per_sample, granule, budget):
    """Largest sample tile under `budget`, rounded to `granule`, with >=2 grid
    steps whenever n allows it (so v7x's two TensorCores both get work)."""
    if n <= granule:
        return n, 1
    t = max(granule, (budget // max(bytes_per_sample, 1)) // granule * granule)
    half = pl.cdiv(pl.cdiv(n, 2), granule) * granule
    t = min(t, half, pl.cdiv(n, granule) * granule)
    return t, pl.cdiv(n, t)


# --------------------------------------------------------------------------- #
# 'nll' mode: CrossEntropyLoss(class_logits, labels)                           #
# --------------------------------------------------------------------------- #
def _ce_kernel_nc(logits_ref, labels_ref, out_ref, *, n_valid, tile_n):
    """Wide-class layout: logits block (tile_n, C) — samples on sublanes."""
    i = pl.program_id(0)
    x = logits_ref[...].astype(jnp.float32)                     # (tile_n, C)
    t = labels_ref[...]                                         # (tile_n, 1)

    m = jnp.max(x, axis=1, keepdims=True)
    lse = m + jnp.log(jnp.sum(jnp.exp(x - m), axis=1, keepdims=True))
    # TODO(synk): labels outside [0, C) silently give x_t = 0 (torch would error).
    cls = jax.lax.broadcasted_iota(jnp.int32, x.shape, 1)
    x_t = jnp.sum(jnp.where(cls == t, x, 0.0), axis=1, keepdims=True)
    loss = lse - x_t                                            # (tile_n, 1)

    row = jax.lax.broadcasted_iota(jnp.int32, loss.shape, 0) + i * tile_n
    part = jnp.sum(jnp.where(row < n_valid, loss, 0.0), keepdims=True)  # (1, 1)

    lane = jax.lax.broadcasted_iota(jnp.int32, out_ref.shape, 1)
    out_ref[...] = jnp.where(lane == 0, part, 0.0)              # lane-dense partial


def _ce_kernel_cn(logits_ref, labels_ref, out_ref, *, n_valid, tile_n):
    """Small-class layout: logits block (C, tile_n) — samples lane-dense."""
    i = pl.program_id(0)
    x = logits_ref[...].astype(jnp.float32)                     # (C, tile_n)
    t = labels_ref[...]                                         # (1, tile_n)

    m = jnp.max(x, axis=0, keepdims=True)
    lse = m + jnp.log(jnp.sum(jnp.exp(x - m), axis=0, keepdims=True))
    cls = jax.lax.broadcasted_iota(jnp.int32, x.shape, 0)
    x_t = jnp.sum(jnp.where(cls == t, x, 0.0), axis=0, keepdims=True)
    loss = lse - x_t                                            # (1, tile_n)

    col = jax.lax.broadcasted_iota(jnp.int32, loss.shape, 1) + i * tile_n
    part = jnp.sum(jnp.where(col < n_valid, loss, 0.0), keepdims=True)  # (1, 1)

    lane = jax.lax.broadcasted_iota(jnp.int32, out_ref.shape, 1)
    out_ref[...] = jnp.where(lane == 0, part, 0.0)


def cross_entropy_loss(logits, labels):
    n, c = logits.shape
    labels = labels.astype(jnp.int32)
    budget, vmem_limit = _vmem_budget()

    if c >= _LANE:
        # [N, C] streamed directly from HBM: no pad, no transpose pass.
        tile_n, grid_n = _pick_tile(n, c * 4, _SUBLANE, budget)
        kernel = functools.partial(_ce_kernel_nc, n_valid=n, tile_n=tile_n)
        operands = (logits, labels.reshape(n, 1))
        in_specs = [pl.BlockSpec((tile_n, c), lambda i: (i, 0)),
                    pl.BlockSpec((tile_n, 1), lambda i: (i, 0))]
    else:
        # Small C: classes on sublanes, samples lane-dense (cheap .T, no pad).
        tile_n, grid_n = _pick_tile(n, c * 4, _LANE, budget)
        kernel = functools.partial(_ce_kernel_cn, n_valid=n, tile_n=tile_n)
        operands = (logits.T, labels.reshape(1, n))
        in_specs = [pl.BlockSpec((c, tile_n), lambda i: (0, i)),
                    pl.BlockSpec((1, tile_n), lambda i: (0, i))]

    partials = pl.pallas_call(
        kernel,
        out_shape=jax.ShapeDtypeStruct((1, _LANE * grid_n), jnp.float32),
        grid_spec=pltpu.PrefetchScalarGridSpec(
            num_scalar_prefetch=0,
            grid=(grid_n,),
            in_specs=in_specs,
            out_specs=pl.BlockSpec((1, _LANE), lambda i: (0, i)),
        ),
        compiler_params=pltpu.CompilerParams(
            dimension_semantics=("parallel",),          # megacore-splittable
            vmem_limit_bytes=vmem_limit,
        ),
    )(*operands)
    return jnp.sum(partials) / jnp.float32(n)            # 'mean' reduction in the wrapper


# --------------------------------------------------------------------------- #
# 'cos' mode: ProtoSimilarityLoss (cosine-similarity^2, zero diag, 0.5 * mean)  #
# --------------------------------------------------------------------------- #
# TODO(synk): when both 'cos' and 'triplet' are enabled this tiny launch-overhead
# dominated kernel could be fused into the triplet pallas_call as a 2nd output.
def _proto_similarity_kernel(protos_ref, out_ref, *, n_protos):
    x = protos_ref[...].astype(jnp.float32)                      # (P, D)
    inv_norm = jax.lax.rsqrt(jnp.sum(x * x, axis=-1, keepdims=True) + 1e-12)
    xn = x * inv_norm
    s = jax.lax.dot_general(xn, xn, (((1,), (1,)), ((), ())),    # no in-kernel .T
                            preferred_element_type=jnp.float32)
    s2 = s * s                                                   # square via mul, not pow
    r = jax.lax.broadcasted_iota(jnp.int32, s2.shape, 0)
    c = jax.lax.broadcasted_iota(jnp.int32, s2.shape, 1)
    off_diag = jnp.where(r == c, 0.0, s2)
    out_ref[...] = 0.5 * jnp.sum(off_diag, keepdims=True) / jnp.float32(n_protos * n_protos)


def proto_similarity_loss(prototypes):
    p, d = prototypes.shape
    kernel = functools.partial(_proto_similarity_kernel, n_protos=p)
    out = pl.pallas_call(
        kernel,
        out_shape=jax.ShapeDtypeStruct((1, 1), jnp.float32),
        grid_spec=pltpu.PrefetchScalarGridSpec(
            num_scalar_prefetch=0,
            grid=(1,),
            in_specs=[pl.BlockSpec((p, d), lambda i: (0, 0))],
            out_specs=pl.BlockSpec((1, 1), lambda i: (0, 0)),
        ),
        compiler_params=pltpu.CompilerParams(dimension_semantics=("arbitrary",)),
    )(prototypes)
    return out[0, 0]


# --------------------------------------------------------------------------- #
# 'triplet' mode: TripletMarginLoss(margin=0.5, triplets_per_anchor='all')      #
# --------------------------------------------------------------------------- #
def _triplet_kernel(emb_a_ref, emb_all_ref, lab_a_ref, lab_all_ref, out_ref, *,
                    n_valid, tile_a, margin):
    i = pl.program_id(0)

    a_blk = emb_a_ref[...].astype(jnp.float32)                   # (TILE_A, D)
    e_all = emb_all_ref[...].astype(jnp.float32)                 # (N, D)
    # TODO(synk): eps added to squared norm, not the norm (F.normalize adds to norm).
    an = a_blk * jax.lax.rsqrt(jnp.sum(a_blk * a_blk, -1, keepdims=True) + 1e-12)
    en = e_all * jax.lax.rsqrt(jnp.sum(e_all * e_all, -1, keepdims=True) + 1e-12)
    g = jax.lax.dot_general(an, en, (((1,), (1,)), ((), ())),    # (TILE_A, N), no .T
                            preferred_element_type=jnp.float32)
    dist = jnp.sqrt(jnp.maximum(2.0 - 2.0 * g, 0.0))             # anchor->all L2 dists

    lab_a = lab_a_ref[...]                                       # (TILE_A, 1)
    lab_all = lab_all_ref[...]                                   # (1, N)
    same = lab_a == lab_all                                      # (TILE_A, N)
    a_glob = jax.lax.broadcasted_iota(jnp.int32, dist.shape, 0) + i * tile_a
    col = jax.lax.broadcasted_iota(jnp.int32, dist.shape, 1)
    valid = jnp.logical_and(a_glob < n_valid, col < n_valid)     # masks ragged anchor tile
    pos = jnp.logical_and(jnp.logical_and(same, a_glob != col), valid)
    neg = jnp.logical_and(jnp.logical_not(same), valid)

    big = jnp.float32(1e9)
    d_pos = jnp.where(pos, dist, -big)                           # invalid positives -> never violate
    d_neg = jnp.where(neg, dist, big)                            # invalid negatives -> never violate

    def body(a, carry):
        s, c = carry
        oh_col = (jax.lax.broadcasted_iota(jnp.int32, (tile_a, 1), 0) == a
                  ).astype(jnp.float32)                          # (TILE_A, 1)
        oh_row = (jax.lax.broadcasted_iota(jnp.int32, (1, tile_a), 1) == a
                  ).astype(jnp.float32)                          # (1, TILE_A)
        # row a of d_pos laid out as a column over positives, row a of d_neg as a row
        d_ap = jax.lax.dot_general(d_pos, oh_col, (((0,), (0,)), ((), ())),
                                   preferred_element_type=jnp.float32)   # (N, 1)
        d_an = jax.lax.dot_general(oh_row, d_neg, (((1,), (0,)), ((), ())),
                                   preferred_element_type=jnp.float32)   # (1, N)
        l = jnp.maximum(d_ap - d_an + margin, 0.0)               # (N, N) transient only
        s = s + jnp.sum(l, keepdims=True)
        c = c + jnp.sum((l > 0.0).astype(jnp.float32), keepdims=True)
        return s, c

    zero = jnp.zeros((1, 1), jnp.float32)
    total, count = jax.lax.fori_loop(0, tile_a, body, (zero, zero))

    lane = jax.lax.broadcasted_iota(jnp.int32, out_ref.shape, 1)
    out_ref[...] = jnp.where(lane == 0, total,
                             jnp.where(lane == 1, count, 0.0))   # lane-dense partials


def triplet_margin_loss(embeddings, labels, margin=0.5):
    # TODO(synk): assumes pytorch-metric-learning defaults for TripletMarginLoss
    # (LpDistance(p=2) on L2-normalized embeddings, 'all' triplets, AvgNonZeroReducer).
    n, d = embeddings.shape
    labels = labels.astype(jnp.int32)
    _, vmem_limit = _vmem_budget()

    if n <= _SUBLANE:
        tile_a, grid_a = n, 1
    else:
        tile_a = min(_LANE, pl.cdiv(pl.cdiv(n, 2), _SUBLANE) * _SUBLANE)  # >=2 steps
        grid_a = pl.cdiv(n, tile_a)

    kernel = functools.partial(_triplet_kernel, n_valid=n, tile_a=tile_a,
                               margin=float(margin))
    partials = pl.pallas_call(
        kernel,
        out_shape=jax.ShapeDtypeStruct((1, _LANE * grid_a), jnp.float32),
        grid_spec=pltpu.PrefetchScalarGridSpec(
            num_scalar_prefetch=0,
            grid=(grid_a,),
            in_specs=[
                pl.BlockSpec((tile_a, d), lambda i: (i, 0)),   # anchor tile
                pl.BlockSpec((n, d), lambda i: (0, 0)),        # all embeddings
                pl.BlockSpec((tile_a, 1), lambda i: (i, 0)),   # anchor labels (column)
                pl.BlockSpec((1, n), lambda i: (0, 0)),        # all labels (row)
            ],
            out_specs=pl.BlockSpec((1, _LANE), lambda i: (0, i)),
        ),
        compiler_params=pltpu.CompilerParams(
            dimension_semantics=("parallel",),                 # anchor tiles split over TCs
            vmem_limit_bytes=vmem_limit,
        ),
    )(embeddings, embeddings, labels.reshape(n, 1), labels.reshape(1, n))

    parts = partials.reshape(grid_a, _LANE)
    total = jnp.sum(parts[:, 0])
    count = jnp.sum(parts[:, 1])
    return jnp.where(count > 0.0, total / jnp.maximum(count, 1.0), 0.0)


# --------------------------------------------------------------------------- #
# EmbeddingLoss.forward                                                         #
# --------------------------------------------------------------------------- #
def embedding_loss(embeddings=None, emb_labels=None, class_logits=None,
                   class_labels=None, prototypes=None, modes=()):
    """Forward pass of EmbeddingLoss.

    The torch forward's host-side bookkeeping (default indices = arange, label
    remapping through model.get_classes_episode(), stacking the prototype dict)
    is done by the caller; this takes already-gathered embeddings/labels/logits.
    """
    loss = jnp.float32(0.0)
    if "triplet" in modes:
        loss = loss + triplet_margin_loss(embeddings, emb_labels, margin=0.5)
    if "nll" in modes:
        loss = loss + cross_entropy_loss(class_logits, class_labels)
    if "cos" in modes:
        loss = loss + 10.0 * proto_similarity_loss(prototypes)
    return loss


# --------------------------------------------------------------------------- #
# pure-JAX references                                                           #
# --------------------------------------------------------------------------- #
def _cross_entropy_ref(logits, labels):
    x = logits.astype(jnp.float32)
    lse = jax.scipy.special.logsumexp(x, axis=-1)
    x_t = jnp.take_along_axis(x, labels[:, None].astype(jnp.int32), axis=-1)[:, 0]
    return jnp.mean(lse - x_t)


def _proto_similarity_ref(protos):
    x = protos.astype(jnp.float32)
    xn = x * jax.lax.rsqrt(jnp.sum(x * x, axis=-1, keepdims=True) + 1e-12)
    s = xn @ xn.T
    mask = 1.0 - jnp.eye(x.shape[0], dtype=jnp.float32)
    return 0.5 * jnp.mean((s * s) * mask)


def _triplet_ref(emb, labels, margin=0.5):
    x = emb.astype(jnp.float32)
    xn = x * jax.lax.rsqrt(jnp.sum(x * x, axis=-1, keepdims=True) + 1e-12)
    dist = jnp.sqrt(jnp.maximum(2.0 - 2.0 * (xn @ xn.T), 0.0))
    n = x.shape[0]
    same = labels[:, None] == labels[None, :]
    pos = same & ~jnp.eye(n, dtype=bool)
    neg = ~same
    viol = dist[:, :, None] - dist[:, None, :] + margin     # [a, p, nn]
    valid = pos[:, :, None] & neg[:, None, :]
    l = jnp.where(valid, jnp.maximum(viol, 0.0), 0.0)
    cnt = jnp.sum(l > 0)
    return jnp.where(cnt > 0, jnp.sum(l) / jnp.maximum(cnt, 1), 0.0)


if __name__ == "__main__":
    key = jax.random.PRNGKey(0)
    k1, k2, k3, k4, k5, k6, k7, k8 = jax.random.split(key, 8)

    # 'nll': small class count exercises the lane-dense [C, N] path
    n_cls_samples, num_classes = 64, 8
    class_logits = jax.random.normal(k1, (n_cls_samples, num_classes), jnp.float32)
    class_labels = jax.random.randint(k2, (n_cls_samples,), 0, num_classes, dtype=jnp.int32)

    # 'cos': stacked prototypes
    num_protos, emb_dim = 8, 32
    prototypes = jax.random.normal(k3, (num_protos, emb_dim), jnp.float32)

    # 'triplet': embeddings + integer labels (4 classes x 4 samples)
    batch = 16
    embeddings = jax.random.normal(k4, (batch, emb_dim), jnp.float32)
    emb_labels = jax.random.permutation(k5, jnp.repeat(jnp.arange(4, dtype=jnp.int32), 4))

    modes = ("triplet", "nll", "cos")
    loss = embedding_loss(embeddings=embeddings, emb_labels=emb_labels,
                          class_logits=class_logits, class_labels=class_labels,
                          prototypes=prototypes, modes=modes)
    loss = jax.block_until_ready(loss)

    ref = (_triplet_ref(embeddings, emb_labels, 0.5)
           + _cross_entropy_ref(class_logits, class_labels)
           + 10.0 * _proto_similarity_ref(prototypes))
    ref = jax.block_until_ready(ref)
    assert np.allclose(np.asarray(loss), np.asarray(ref), rtol=1e-3, atol=1e-4), (loss, ref)

    # extra coverage: wide-class [N, C] path with a ragged last sample tile
    n2, c2 = 50, 256
    logits2 = jax.random.normal(k6, (n2, c2), jnp.float32)
    labels2 = jax.random.randint(k7, (n2,), 0, c2, dtype=jnp.int32)
    ce2 = jax.block_until_ready(cross_entropy_loss(logits2, labels2))
    assert np.allclose(np.asarray(ce2), np.asarray(_cross_entropy_ref(logits2, labels2)),
                       rtol=1e-3, atol=1e-4), ce2

    # extra coverage: ragged anchor tile in the triplet kernel
    emb3 = jax.random.normal(k8, (13, emb_dim), jnp.float32)
    lab3 = jnp.array([0, 0, 0, 1, 1, 1, 2, 2, 2, 3, 3, 3, 0], jnp.int32)
    t3 = jax.block_until_ready(triplet_margin_loss(emb3, lab3, 0.5))
    assert np.allclose(np.asarray(t3), np.asarray(_triplet_ref(emb3, lab3, 0.5)),
                       rtol=1e-3, atol=1e-4), t3

    print("KERNEL_OK")
</pallas_src>

<mosaic_0001>
module attributes {stable_mosaic.version = 11 : i64} {
  func.func @_triplet_kernel(%arg0: i32, %arg1: memref<8x32xf32, #tpu.memory_space<vmem>>, %arg2: memref<16x32xf32, #tpu.memory_space<vmem>>, %arg3: memref<8x1xi32, #tpu.memory_space<vmem>>, %arg4: memref<1x16xi32, #tpu.memory_space<vmem>>, %arg5: memref<1x128xf32, #tpu.memory_space<vmem>>) attributes {dimension_semantics = [#tpu.dimension_semantics<parallel>], iteration_bounds = array<i64: 2>, scalar_prefetch = 0 : i64, scratch_operands = 0 : i64, tpu.core_type = #tpu.core_type<tc>, window_params = [{transform_indices = @transform_0, window_bounds = array<i64: 8, 32>}, {pipeline_mode = #tpu.pipeline_mode<synchronous>, transform_indices = @transform_1, window_bounds = array<i64: 16, 32>}, {transform_indices = @transform_2, window_bounds = array<i64: 8, 1>}, {pipeline_mode = #tpu.pipeline_mode<synchronous>, transform_indices = @transform_3, window_bounds = array<i64: 1, 16>}, {transform_indices = @transform_4, window_bounds = array<i64: 1, 128>}]} {
    %c0 = arith.constant 0 : index
    %c0_0 = arith.constant 0 : index
    %0 = vector.load %arg1[%c0, %c0_0] : memref<8x32xf32, #tpu.memory_space<vmem>>, vector<8x32xf32>
    %c0_1 = arith.constant 0 : index
    %c0_2 = arith.constant 0 : index
    %1 = vector.load %arg2[%c0_1, %c0_2] : memref<16x32xf32, #tpu.memory_space<vmem>>, vector<16x32xf32>
    %2 = arith.mulf %0, %0 : vector<8x32xf32>
    %cst = arith.constant dense<0.000000e+00> : vector<8xf32>
    %3 = vector.multi_reduction <add>, %2, %cst [1] : vector<8x32xf32> to vector<8xf32>
    %4 = vector.shape_cast %3 : vector<8xf32> to vector<8x1xf32>
    %cst_3 = arith.constant 9.99999996E-13 : f32
    %5 = vector.broadcast %cst_3 : f32 to vector<8x1xf32>
    %6 = arith.addf %4, %5 : vector<8x1xf32>
    %7 = math.rsqrt %6 : vector<8x1xf32>
    %8 = vector.broadcast %7 : vector<8x1xf32> to vector<8x32xf32>
    %9 = arith.mulf %0, %8 : vector<8x32xf32>
    %10 = arith.mulf %1, %1 : vector<16x32xf32>
    %cst_4 = arith.constant dense<0.000000e+00> : vector<16xf32>
    %11 = vector.multi_reduction <add>, %10, %cst_4 [1] : vector<16x32xf32> to vector<16xf32>
    %12 = vector.shape_cast %11 : vector<16xf32> to vector<16x1xf32>
    %cst_5 = arith.constant 9.99999996E-13 : f32
    %13 = vector.broadcast %cst_5 : f32 to vector<16x1xf32>
    %14 = arith.addf %12, %13 : vector<16x1xf32>
    %15 = math.rsqrt %14 : vector<16x1xf32>
    %16 = vector.broadcast %15 : vector<16x1xf32> to vector<16x32xf32>
    %17 = arith.mulf %1, %16 : vector<16x32xf32>
    %cst_6 = arith.constant dense<0.000000e+00> : vector<8x16xf32>
    %18 = tpu.matmul %9, %17, %cst_6 {dimension_numbers = #tpu.dot_dimension_numbers<[1], [1], [0], [0], [0, 0, 1, 0], [], []>} : vector<8x32xf32>, vector<16x32xf32>, vector<8x16xf32> -> vector<8x16xf32>
    %cst_7 = arith.constant 2.000000e+00 : f32
    %19 = vector.broadcast %cst_7 : f32 to vector<8x16xf32>
    %20 = arith.mulf %19, %18 : vector<8x16xf32>
    %cst_8 = arith.constant 2.000000e+00 : f32
    %21 = vector.broadcast %cst_8 : f32 to vector<8x16xf32>
    %22 = arith.subf %21, %20 : vector<8x16xf32>
    %cst_9 = arith.constant 0.000000e+00 : f32
    %23 = vector.broadcast %cst_9 : f32 to vector<8x16xf32>
    %24 = arith.maximumf %22, %23 : vector<8x16xf32>
    %25 = math.sqrt %24 : vector<8x16xf32>
    %c0_10 = arith.constant 0 : index
    %c0_11 = arith.constant 0 : index
    %26 = vector.load %arg3[%c0_10, %c0_11] : memref<8x1xi32, #tpu.memory_space<vmem>>, vector<8x1xi32>
    %c0_12 = arith.constant 0 : index
    %c0_13 = arith.constant 0 : index
    %27 = vector.load %arg4[%c0_12, %c0_13] : memref<1x16xi32, #tpu.memory_space<vmem>>, vector<1x16xi32>
    %28 = vector.broadcast %26 : vector<8x1xi32> to vector<8x16xi32>
    %29 = vector.broadcast %27 : vector<1x16xi32> to vector<8x16xi32>
    %30 = arith.cmpi eq, %28, %29 : vector<8x16xi32>
    %31 = tpu.iota {dimensions = array<i32: 0>} : vector<8x16xi32>
    %c8_i32 = arith.constant 8 : i32
    %32 = arith.muli %arg0, %c8_i32 : i32
    %33 = vector.broadcast %32 : i32 to vector<8x16xi32>
    %34 = arith.addi %31, %33 : vector<8x16xi32>
    %35 = tpu.iota {dimensions = array<i32: 1>} : vector<8x16xi32>
    %c16_i32 = arith.constant 16 : i32
    %36 = vector.broadcast %c16_i32 : i32 to vector<8x16xi32>
    %37 = arith.cmpi slt, %34, %36 : vector<8x16xi32>
    %c16_i32_14 = arith.constant 16 : i32
    %38 = vector.broadcast %c16_i32_14 : i32 to vector<8x16xi32>
    %39 = arith.cmpi slt, %35, %38 : vector<8x16xi32>
    %40 = arith.andi %37, %39 : vector<8x16xi1>
    %41 = arith.cmpi ne, %34, %35 : vector<8x16xi32>
    %42 = arith.andi %30, %41 : vector<8x16xi1>
    %43 = arith.andi %42, %40 : vector<8x16xi1>
    %cst_15 = arith.constant dense<true> : vector<8x16xi1>
    %44 = arith.xori %30, %cst_15 : vector<8x16xi1>
    %45 = arith.andi %44, %40 : vector<8x16xi1>
    %cst_16 = arith.constant 0.000000e+00 : f32
    %cst_17 = arith.constant 1.000000e+09 : f32
    %46 = arith.subf %cst_16, %cst_17 : f32
    %47 = vector.broadcast %46 : f32 to vector<8x16xf32>
    %48 = arith.select %43, %25, %47 : vector<8x16xi1>, vector<8x16xf32>
    %cst_18 = arith.constant 1.000000e+09 : f32
    %49 = vector.broadcast %cst_18 : f32 to vector<8x16xf32>
    %50 = arith.select %45, %25, %49 : vector<8x16xi1>, vector<8x16xf32>
    %cst_19 = arith.constant 0.000000e+00 : f32
    %51 = vector.broadcast %cst_19 : f32 to vector<1x1xf32>
    %c0_i32 = arith.constant 0 : i32
    %c8_i32_20 = arith.constant 8 : i32
    %52 = arith.addi %c0_i32, %c8_i32_20 : i32
    %c1_i32 = arith.constant 1 : i32
    %53:2 = scf.for %arg6 = %c0_i32 to %52 step %c1_i32 iter_args(%arg7 = %51, %arg8 = %51) -> (vector<1x1xf32>, vector<1x1xf32>)  : i32 {
      %67 = tpu.iota {dimensions = array<i32: 0>} : vector<8x1xi32>
      %68 = vector.broadcast %arg6 : i32 to vector<8x1xi32>
      %69 = arith.cmpi eq, %67, %68 : vector<8x1xi32>
      %70 = arith.extui %69 : vector<8x1xi1> to vector<8x1xi32>
      %71 = arith.sitofp %70 : vector<8x1xi32> to vector<8x1xf32>
      %72 = tpu.iota {dimensions = array<i32: 1>} : vector<1x8xi32>
      %73 = vector.broadcast %arg6 : i32 to vector<1x8xi32>
      %74 = arith.cmpi eq, %72, %73 : vector<1x8xi32>
      %75 = arith.extui %74 : vector<1x8xi1> to vector<1x8xi32>
      %76 = arith.sitofp %75 : vector<1x8xi32> to vector<1x8xf32>
      %cst_27 = arith.constant dense<0.000000e+00> : vector<16x1xf32>
      %77 = tpu.matmul %48, %71, %cst_27 {dimension_numbers = #tpu.dot_dimension_numbers<[0], [0], [1], [1], [0, 1, 1, 1], [], []>} : vector<8x16xf32>, vector<8x1xf32>, vector<16x1xf32> -> vector<16x1xf32>
      %cst_28 = arith.constant dense<0.000000e+00> : vector<1x16xf32>
      %78 = tpu.matmul %76, %50, %cst_28 {dimension_numbers = #tpu.dot_dimension_numbers<[1], [0], [0], [1], [0, 0, 1, 1], [], []>} : vector<1x8xf32>, vector<8x16xf32>, vector<1x16xf32> -> vector<1x16xf32>
      %79 = vector.broadcast %77 : vector<16x1xf32> to vector<16x16xf32>
      %80 = vector.broadcast %78 : vector<1x16xf32> to vector<16x16xf32>
      %81 = arith.subf %79, %80 : vector<16x16xf32>
      %cst_29 = arith.constant 5.000000e-01 : f32
      %82 = vector.broadcast %cst_29 : f32 to vector<16x16xf32>
      %83 = arith.addf %81, %82 : vector<16x16xf32>
      %cst_30 = arith.constant 0.000000e+00 : f32
      %84 = vector.broadcast %cst_30 : f32 to vector<16x16xf32>
      %85 = arith.maximumf %83, %84 : vector<16x16xf32>
      %86 = vector.shape_cast %85 : vector<16x16xf32> to vector<1x16x16xf32>
      %cst_31 = arith.constant dense<0.000000e+00> : vector<1xf32>
      %87 = vector.multi_reduction <add>, %86, %cst_31 [1, 2] : vector<1x16x16xf32> to vector<1xf32>
      %88 = vector.shape_cast %87 : vector<1xf32> to vector<1x1x1xf32>
      %89 = vector.extract %88[0, 0, 0] : f32 from vector<1x1x1xf32>
      %90 = vector.broadcast %89 : f32 to vector<1x1xf32>
      %91 = arith.addf %arg7, %90 : vector<1x1xf32>
      %cst_32 = arith.constant 0.000000e+00 : f32
      %92 = vector.broadcast %cst_32 : f32 to vector<16x16xf32>
      %93 = arith.cmpf ogt, %85, %92 : vector<16x16xf32>
      %94 = arith.extui %93 : vector<16x16xi1> to vector<16x16xi32>
      %95 = arith.sitofp %94 : vector<16x16xi32> to vector<16x16xf32>
      %96 = vector.shape_cast %95 : vector<16x16xf32> to vector<1x16x16xf32>
      %cst_33 = arith.constant dense<0.000000e+00> : vector<1xf32>
      %97 = vector.multi_reduction <add>, %96, %cst_33 [1, 2] : vector<1x16x16xf32> to vector<1xf32>
      %98 = vector.shape_cast %97 : vector<1xf32> to vector<1x1x1xf32>
      %99 = vector.extract %98[0, 0, 0] : f32 from vector<1x1x1xf32>
      %100 = vector.broadcast %99 : f32 to vector<1x1xf32>
      %101 = arith.addf %arg8, %100 : vector<1x1xf32>
      scf.yield %91, %101 : vector<1x1xf32>, vector<1x1xf32>
    }
    %c8_i32_21 = arith.constant 8 : i32
    %54 = tpu.iota {dimensions = array<i32: 1>} : vector<1x128xi32>
    %c0_i32_22 = arith.constant 0 : i32
    %55 = vector.broadcast %c0_i32_22 : i32 to vector<1x128xi32>
    %56 = arith.cmpi eq, %54, %55 : vector<1x128xi32>
    %c1_i32_23 = arith.constant 1 : i32
    %57 = vector.broadcast %c1_i32_23 : i32 to vector<1x128xi32>
    %58 = arith.cmpi eq, %54, %57 : vector<1x128xi32>
    %cst_24 = arith.constant 0.000000e+00 : f32
    %59 = vector.shape_cast %53#1 : vector<1x1xf32> to vector<1x1xf32>
    %60 = vector.broadcast %59 : vector<1x1xf32> to vector<1x128xf32>
    %61 = vector.broadcast %cst_24 : f32 to vector<1x128xf32>
    %62 = arith.select %58, %60, %61 : vector<1x128xi1>, vector<1x128xf32>
    %63 = vector.shape_cast %53#0 : vector<1x1xf32> to vector<1x1xf32>
    %64 = vector.broadcast %63 : vector<1x1xf32> to vector<1x128xf32>
    %65 = arith.select %56, %64, %62 : vector<1x128xi1>, vector<1x128xf32>
    %c0_25 = arith.constant 0 : index
    %c0_26 = arith.constant 0 : index
    %66 = vector.load %arg5[%c0_25, %c0_26] : memref<1x128xf32, #tpu.memory_space<vmem>>, vector<1x128xf32>
    tpu.vector_store %arg5[%c0_25, %c0_26], %65 {strides = array<i32>} : memref<1x128xf32, #tpu.memory_space<vmem>>, vector<1x128xf32>,
    return
  }
  func.func @transform_0(%arg0: i32) -> (i32, i32) {
    %c0_i32 = arith.constant 0 : i32
    %c0_i32_0 = arith.constant 0 : i32
    return %arg0, %c0_i32 : i32, i32
  }
  func.func @transform_1(%arg0: i32) -> (i32, i32) {
    %c0_i32 = arith.constant 0 : i32
    %c0_i32_0 = arith.constant 0 : i32
    %c0_i32_1 = arith.constant 0 : i32
    return %c0_i32, %c0_i32_0 : i32, i32
  }
  func.func @transform_2(%arg0: i32) -> (i32, i32) {
    %c0_i32 = arith.constant 0 : i32
    %c0_i32_0 = arith.constant 0 : i32
    return %arg0, %c0_i32 : i32, i32
  }
  func.func @transform_3(%arg0: i32) -> (i32, i32) {
    %c0_i32 = arith.constant 0 : i32
    %c0_i32_0 = arith.constant 0 : i32
    %c0_i32_1 = arith.constant 0 : i32
    return %c0_i32, %c0_i32_0 : i32, i32
  }
  func.func @transform_4(%arg0: i32) -> (i32, i32) {
    %c0_i32 = arith.constant 0 : i32
    %c0_i32_0 = arith.constant 0 : i32
    return %c0_i32, %arg0 : i32, i32
  }
}

</mosaic_0001>

<bundles_post_ra>
// kernel: tpu_custom_call.1
= control target key start
LH: loop header
LB: loop body
LE: loop exit
PB: predicated region body
PF: predicated region fallthrough
CT: control target
= control target key end

     0   :  { %9 = vsyncpa [#allocation3], 0  ;;  %s1241_s0 = inlined_call_operand.vmem [shape: f32[16,32], index: 0, kind: input, shape index: {}]   ;;  %s1242_s1 = inlined_call_operand.hbm [shape: f32[16,32], index: 1, kind: input, shape index: {}]   ;;  %s1243_s2 = inlined_call_operand.vmem [shape: s32[16,1], index: 2, kind: input, shape index: {}]   ;;  %s1244_s3 = inlined_call_operand.vmem [shape: s32[1,16], index: 3, kind: input, shape index: {}]   ;;  %s1245_s4 = inlined_call_operand.hbm [shape: f32[1,256], index: 4, kind: output, shape index: {}]  }
   0x1   :  { %10 = vsyncpa [#allocation4], 0 }
   0x2   :  { %12 = vsyncpa [#allocation4 + $0x1], 0  ;;  %s1042_s15 = smov 0   ;;  %s1044_s16 = smov 0  }
   0x3   :  { %s1046_s17 = smov 0   ;;  %s1048_s18 = smov 0  }
   0x4 LB: > { %s1063_s19 = sadd.s32 4294967295, %s990_s18   ;;  %s730_s20 = sadd.s32 4294967294, %s990_s18   ;;  %s990_s18 = sphi %s1048_s18, %s1263_s18   ;;  %s986_s17 = sphi %s1046_s17, %s1262_s17   ;;  %s982_s16 = sphi %s1044_s16, %s1261_s16   ;;  %s978_s15 = sphi %s1042_s15, %s1260_s15  }
   0x5   : > { %s1067_s21 = sadd.s32 1, %s990_s18   ;;  %s119_s22 = sadd.s32 1, %s986_s17 }
   0x6   : > { %s116_s23 = ssub.s32 %s990_s18, %s1067_s21  ;;  %p129_p0 = scmp.ne.s32.totalorder %s986_s17, %s982_s16 }
   0x7   : > { %p117_p1 = scmp.eq.s32.totalorder %s116_s23, 0  ;;  %p130_p2 = scmp.eq.s32.totalorder %s1063_s19, 1 }
   0x8   : > { %p135_p3 = scmp.ne.s32.totalorder %s982_s16, %s978_s15  ;;  %p136_p4 = scmp.eq.s32.totalorder %s730_s20, 1 }
   0x9   : > { %s1078_s24 = scalar_select %p117_p1, %s986_s17, %s119_s22  }
   0xa   : > { %p1080_p5 = por %p130_p2, %p129_p0  ;;  %p1084_p6 = por %p136_p4, %p135_p3 }
   0xb   : > { %p731_p7 = scmp.ge.s32.totalorder %s990_s18, 1  ;;  %p143_p8 = scmp.lt.s32.totalorder %s990_s18, 3 }
   0xc   : > { %s1249_s25 = scalar_select %p1080_p5, 1, 0 }
   0xd   : > { %s1250_s26 = scalar_select %p1084_p6, 1, 0 }
   0xe   : > { %p1246_p9 = scmp.eq.s32.totalorder %s1063_s19, 0  ;;  %p1091_p10 = pnand %p731_p7, %p143_p8 }
   0xf   : > { %s1004_s28 = smov [#allocation2]   ;;  %s884_s7 = scalar_lea.hbm %s1242_s1, 256 }
  0x10   : > { %s1251_s27 = scalar_select %p1091_p10, 1, 0 }
  0x11   : > { %s155_s29 = sshll.u32 %s1004_s28, 4  ;;  %p793_p11 = pneg %p1091_p10  ;;  %s156_s29 = int_to_ptr.vmem [resolvable:$true] %s155_s29 }
  0x12   : > { %p885_p13 = scmp.ne.s32.totalorder %s1242_s1, %s884_s7  ;;  %p891_p3 = scmp.lt.u32.totalorder %s884_s7, %s1242_s1 }
  0x13   : > { %p1099_p12 = pnand %p1246_p9, %p793_p11 }
  0x15   : > { %p886_p0 = pneg %p1099_p12 }
  0x17   : > { %p887_p1 = pnand %p886_p0, %p885_p13 }
  0x19   : > { %p888_p2 = pneg %p887_p1 }
  0x1b   : > { %p893_p4 = pnand %p891_p3, %p888_p2 }
  0x1d   : > { %896 = shalt.err (!%p893_p4)
}
  0x1e   : > { %s897_s12 = scalar_lea.vmem %s156_s29, 256  ;;  %p905_p9 = scmp.lt.s32.totalorder %s156_s29, %s156_s29 }
  0x1f   : > { %p898_p7 = scmp.ne.s32.totalorder %s156_s29, %s897_s12  ;;  %p906_p6 = scmp.lt.s32.totalorder %s897_s12, %s897_s12 }
  0x21   : > { %p900_p8 = pnand %p898_p7, %p886_p0  ;;  %p907_p5 = por %p906_p6, %p905_p9 }
  0x23   : > { %p901_p11 = pneg %p900_p8 }
  0x25   : > { %p908_p10 = pnand %p907_p5, %p901_p11 }
  0x27   : > { %911 = shalt.err (!%p908_p10)
}
  0x28   : > { %s1005_s13 = smov 128   ;;  %s1006_s14 = smov 8  }
  0x29   : > { %796 = dma.hbm_to_vmem [thread:$0]  (!%p1099_p12), %s1242_s1, 256, %s156_s29, [#allocation3], %s1005_s13, %s1005_s13, %s1006_s14  }
  0x2a   : > { %p1253_p13 = scmp.ne.s32.totalorder %s1251_s27, 0 }
  0x2b   : > { %p1254_p1 = scmp.eq.s32.totalorder (!%p1253_p13), %s1063_s19, 0 }
  0x2c   : > { %188 = sbr.rel (%p1253_p13) target bundleno = 1170 (0x492), region = 36 }
  0x33   : > { %969 = dma.done.wait (%p1254_p1), [#allocation3], 256   ;;  %p1255_p0 = pmov %p1254_p1 }
  0x34   : > { %p216_p5 = scmp.lt.s32.totalorder %s1063_s19, 1  ;;  %v225_v0 = vld [vmem:[#allocation2] sm:$0xff]  ;;  %vm228_vm0 = vcmask 261120   ;;  %v226_v1 = vld [vmem:[#allocation2 + $0x8] sm:$0xff]  ;;  %s214_s27 = sand.u32 1, %s982_s16   ;;  %v1007_v9 = vmov 0.0|0.0   ;;  %v348_v26 = vlaneseq }
  0x35   : > { %971 = vsyncadd (%p1255_p0), [#allocation3], 4294967040  ;;  %v235_v3 = vmul.f32 %v225_v0, %v225_v0  ;;  %v236_v4 = vmul.f32 %v226_v1, %v226_v1  ;;  %779 = vmatprep.subr.bf16.mxu0 %v1007_v9  ;;  %vm1008_vm1 = vmmov 0   ;;  %v1009_v10 = vmov 0.0   ;;  %s742_s9 = sshll.u32 %s1063_s19, 3  ;;  %s1157_s12 = scalar_lea.vmem [#allocation5], %s214_s27 }
  0x36   : > { %s217_s23 = scalar_select %p216_p5, %s1063_s19, 1  ;;  %766 = vmatprep.mubr.msk.f32.mxu0 %vm1008_vm1, %v1009_v10  ;;  %v1010_v11 = vmov 0   ;;  %vm781_vm2 = vmpackc.low %vm228_vm0, %vm228_vm0  ;;  %v1141_v31 = vshrl.u32 %v348_v26, 7  ;;  %v351_v32 = vstv %s742_s9  ;;  %v1144_v35 = vand.u32 127, %v348_v26  ;;  %v741_v36 = vld [vmem:[%s1244_s3] ss:$0 sm:$0xff] }
  0x37   : > { %v237_v6 = vsel %vm228_vm0, %v235_v3, 0.0  ;;  %v240_v8 = vsel %vm228_vm0, %v236_v4, 0.0  ;;  %872 = vset.pattern.permute.xlu1 %v1010_v11  ;;  %873 = vset.pattern.permute.xlu0 %v1010_v11  ;;  %vm1011_vm9 = vmmov 1   ;;  %v1159_v45 = vmov 0.0   ;;  %s1163_s13 = smov 0  }
  0x38   : > { %s736_s28 = sshll.u32 %s217_s23, 3  ;;  %238 = vadd.xlane.f32.xlu0 %v237_v6  ;;  %v352_v34 = vadd.s32 %v351_v32, %v1141_v31  ;;  %vm356_vm4 = vcmp.lt.s32.totalorder %v1144_v35, 16  ;;  %v1161_v46 = vmov 0.0  }
  0x39   : > { %s219_s6 = scalar_lea.vmem %s1241_s0, %s736_s28  ;;  %s223_s8 = scalar_lea.vmem %s1243_s2, %s736_s28 }
  0x3a   : > { %v224_v2 = vld [vmem:[%s219_s6] sm:$0xff]  ;;  %vm355_vm3 = vcmp.lt.s32.totalorder %v352_v34, 16  ;;  %vm358_vm5 = vcmp.ne.s32.totalorder %v352_v34, %v1144_v35 }
  0x3b   : > { %v227_v5 = vmul.f32 %v224_v2, %v224_v2  ;;  %v338_v12 = vld [vmem:[%s223_s8] sm:$0xff]  ;;  %vm357_vm7 = vmand %vm355_vm3, %vm356_vm4 }
  0x3c   : > { %241 = vadd.xlane.f32.xlu0 %v240_v8 }
  0x3d   : > { %v229_v7 = vsel %vm228_vm0, %v227_v5, 0.0 }
  0x3e   : > { %230 = vadd.xlane.f32.xlu1 %v229_v7 }
  0x4f   : > { %341 = vperm.xlu1 %872, %v338_v12  }
  0xc5   : > { %v239_v13 = vpop.xlane.xlu0 %238 }
  0xc6   : > { %v243_v14 = vadd.f32 1e-12, %v239_v13 }
  0xc8   : > { %874 = vrsqrt.f32 %v243_v14 }
  0xc9   : > { %v242_v15 = vpop.xlane.xlu0 %241 }
  0xca   : > { %v244_v16 = vadd.f32 1e-12, %v242_v15 }
  0xcb   : > { %v231_v17 = vpop.xlane.xlu1 %230 }
  0xcc   : > { %876 = vrsqrt.f32 %v244_v16  ;;  %v232_v18 = vadd.f32 1e-12, %v231_v17 }
  0xce   : > { %878 = vrsqrt.f32 %v232_v18 }
  0xcf   : > { %v342_v37 = vpop.permute.xlu1 %341 }
  0xd0   : > { %vm347_vm6 = vcmp.eq.s32.totalorder %v342_v37, %v741_v36 }
  0xd1   : > { %vm359_vm8 = vmand %vm347_vm6, %vm358_vm5 }
  0xd2   : > { %v875_v19 = vpop.eup %874  ;;  %vm361_vm10 = vmxor %vm347_vm6, %vm1011_vm9 }
  0xd3   : > { %v247_v21 = vmul.f32 %v875_v19, %v225_v0  ;;  %vm360_vm11 = vmand %vm359_vm8, %vm357_vm7 }
  0xd4   : > { %vm362_vm13 = vmand %vm361_vm10, %vm357_vm7 }
  0xd6   : > { %v877_v20 = vpop.eup %876 }
  0xd7   : > { %v248_v22 = vmul.f32 %v877_v20, %v226_v1 }
  0xd8   : > { %v879_v24 = vpop.eup %878 }
  0xd9   : > { %v780_v23 = vpack.c.bf16 %v248_v22, %v247_v21  ;;  %v234_v25 = vmul.f32 %v879_v24, %v224_v2 }
  0xdb   : > { %782 = vmatpush3.bf16.xpose.msk.msra.mxu0 %vm781_vm2, %v780_v23 }
  0xe2   : > { %767 = vmatmul.mubr.msk.f32.vlgmr.msra.gmra.mrb[0].mxu0 %vm228_vm0, %v234_v25 }
 0x1b5   : > { %v324_v27 = vpop.f32.mrb[0].mxu0 }
 0x1b6   : > { %v328_v28 = vmul.f32 2.0, %v324_v27  ;;  %v768_v29 = vpop.f32.mrb[1].mxu0 }
 0x1b8   : > { %v329_v30 = vsub.f32 2.0, %v328_v28 }
 0x1ba   : > { %v330_v33 = vmax.f32 %v329_v30, 0.0 }
 0x1bc   : > { %880 = vrsqrt.f32 %v330_v33  ;;  %vm333_vm12 = vcmp.eq.f32.partialorder %v330_v33, inf  ;;  %v336_v40 = vand.u32 2147483648, %v330_v33  ;;  %vm335_vm14 = vcmp.eq.f32.partialorder %v330_v33, 0.0 }
 0x1c6   : > { %v881_v38 = vpop.eup %880 }
 0x1c7   : > { %v332_v39 = vmul.f32 %v881_v38, %v330_v33 }
 0x1c9   : > { %v334_v41 = vsel %vm333_vm12, %v330_v33, %v332_v39 }
 0x1ca   : > { %v337_v42 = vsel %vm335_vm14, %v336_v40, %v334_v41 }
 0x1cb   : > { %v1151_v43 = vsel %vm360_vm11, %v337_v42, -1e+09  ;;  %v1153_v44 = vsel %vm362_vm13, %v337_v42, 1e+09 }
 0x1cc LB: >> { %380 = vxpose.xlu0.b32.start.end [1/1] (short) (narrow) %v1151_v43, 16  ;;  %v373_v47 = vstv %s1002_s13  ;;  %v1012_v48 = vmov 1.0   ;;  %v1013_v49 = vmov 0.0   ;;  %vm1014_vm1 = vmmov 0   ;;  %s370_s13 = sadd.s32 1, %s1002_s13   ;;  %s1002_s13 = sphi %s1163_s13, %s370_s13   ;;  %v998_v46 = vphi %v1161_v46, %v1257_v46   ;;  %v994_v45 = vphi %v1159_v45, %v1256_v45  }
 0x1cd   : >> { %vm374_vm15 = vcmp.eq.s32.totalorder %v1141_v31, %v373_v47  ;;  %vm377_vm0 = vcmp.eq.s32.totalorder %v1144_v35, %v373_v47  ;;  %774 = vmatprep.subr.mxu1 %v1013_v49  ;;  %776 = vmatprep.mubr.msk.f32.mxu1 %vm1014_vm1, %v1013_v49  ;;  %vm412_vm2 = vcmask 64512   ;;  %v1015_v51 = vmov 0   ;;  %p367_p6 = scmp.ge.s32.totalorder %s370_s13, 8  }
 0x1ce   : >> { %769 = vmatprep.subr.msk.mxu0 %vm374_vm15, %v1012_v48  ;;  %v744_v50 = vsel %vm377_vm0, 1.0, %v1013_v49  ;;  %775 = vmatpush3.msra.mxu1 %v1153_v44  ;;  %v579_v58 = vsub.s32 0, %v1141_v31  ;;  %vm587_vm3 = vcmask 130048   ;;  %vm622_vm6 = vcmp.eq.s32.totalorder (%p367_p6), %v1144_v35, 0  ;;  %s751_s22 = sshll.u32 (%p367_p6), %s1063_s19, 4  ;;  %s640_s5 = sshll.u32 (%p367_p6), %s1157_s12, 4  ;;  %s1198_s5 = int_to_ptr.vmem [resolvable:$true] %s640_s5 }
 0x1cf   : >> { %770 = vmatpush3.msk.msra.mxu0 %vm374_vm15, %v1012_v48  ;;  %883 = vset.pattern.permute.xlu1 %v1015_v51  ;;  %vm623_vm7 = vcmp.eq.s32.totalorder (%p367_p6), %v1144_v35, 1  ;;  %s1195_s30 = scalar_lea.hbm (%p367_p6), %s1245_s4, %s751_s22  ;;  %s628_s6 = scalar_lea.sflag (%p367_p6), [#allocation4], %s214_s27 }
 0x1d0   : >> { %777 = vmatmul.mubr.msk.f32.vlgmr.msra.gmra.mrb[0].mxu1 %vm412_vm2, %v744_v50  ;;  %s912_s29 = scalar_lea.vmem (%p367_p6), %s1198_s5, 16  ;;  %p1258_p10 = scmp.ne.s32.totalorder (%p367_p6), %s1249_s25, 0 }
 0x1d1   : > { %p913_p9 = scmp.ne.s32.totalorder (%p367_p6), %s1198_s5, %s912_s29  ;;  %s1016_s19 = smov (%p367_p6), [#allocation5]  }
 0x1d2   : > { %s916_s7 = sshll.u32 (%p367_p6), %s1016_s19, 4  ;;  %s917_s7 = int_to_ptr.vmem [resolvable:$false] %s916_s7 }
 0x1d3   : > { %p914_p12 = pnand (%p367_p6), %p913_p9, %p1258_p10  ;;  %s918_s8 = scalar_lea.vmem (%p367_p6), %s917_s7, 32 }
 0x1d4   : > { %p919_p3 = scmp.lt.s32.totalorder (%p367_p6), %s1198_s5, %s917_s7  ;;  %p920_p4 = scmp.lt.s32.totalorder (%p367_p6), %s918_s8, %s912_s29 }
 0x1d5   : > { %p915_p2 = pneg (%p367_p6), %p914_p12 }
 0x1d6   : > { %p921_p7 = por (%p367_p6), %p920_p4, %p919_p3 }
 0x1d8   : > { %p922_p8 = pnand (%p367_p6), %p921_p7, %p915_p2 }
 0x1f5   : >> { %882 = vset.pattern.permute.xlu0 %v1015_v51 }
 0x24c   : >> { %v396_v52 = vpop.trf.xlu0 }
 0x24d   : >> { %771 = vmatprep.mubr.msk.f32.mxu0 %vm412_vm2, %v396_v52 }
 0x250   : >> { %v397_v53 = vpop.trf.xlu0 }
 0x251   : >> { %772 = vmatmul.mubr.msk.f32.vlgmr.msra.gmra.mrb[0].mxu0 %vm412_vm2, %v397_v53 }
 0x2a3   : >> { %v563_v54 = vpop.f32.mrb[0].mxu1 }
 0x2a4   : >> { %v778_v55 = vpop.f32.mrb[1].mxu1  ;;  %v580_v59 = vrot.slane %v563_v54, %v579_v58 }
 0x324   : >> { %v773_v56 = vpop.f32.mrb[0].mxu0 }
 0x325   : >> { %574 = vperm.xlu1 %883, %v773_v56   ;;  %v485_v57 = vpop.f32.mrb[1].mxu0 }
 0x326   : >> { %569 = vperm.xlu0 %882, %v485_v57  }
 0x3a4   : >> { %v575_v60 = vpop.permute.xlu1 %574 }
 0x3a5   : >> { %v582_v61 = vsub.f32 %v575_v60, %v580_v59  ;;  %v570_v62 = vpop.permute.xlu0 %569 }
 0x3a6   : >> { %v581_v63 = vsub.f32 %v570_v62, %v580_v59 }
 0x3a7   : >> { %v584_v0 = vadd.f32 0.5, %v582_v61 }
 0x3a8   : >> { %v583_v1 = vadd.f32 0.5, %v581_v63 }
 0x3a9   : >> { %v586_v2 = vmax.f32 %v584_v0, 0.0 }
 0x3aa   : >> { %v585_v3 = vmax.f32 %v583_v1, 0.0 }
 0x3ab   : >> { %vm603_vm4 = vcmp.gt.f32.partialorder %v586_v2, 0.0  ;;  %v589_v4 = vsel %vm587_vm3, %v586_v2, 0.0 }
 0x3ac   : >> { %vm602_vm5 = vcmp.gt.f32.partialorder %v585_v3, 0.0  ;;  %v588_v5 = vsel %vm587_vm3, %v585_v3, 0.0  ;;  %v750_v6 = vsel %vm603_vm4, 1.0, %v1013_v49 }
 0x3ad   : >> { %v590_v7 = vadd.f32 %v589_v4, %v588_v5  ;;  %v749_v8 = vsel %vm602_vm5, 1.0, %v1013_v49  ;;  %v609_v10 = vsel %vm587_vm3, %v750_v6, 0.0 }
 0x3ae   : >> { %v608_v9 = vsel %vm587_vm3, %v749_v8, 0.0 }
 0x3af   : >> { %591 = vadd.xlane.f32.xlu1 %v590_v7  ;;  %v610_v11 = vadd.f32 %v609_v10, %v608_v9 }
 0x3b3   : >> { %611 = vadd.xlane.f32.xlu1 %v610_v11 }
 0x43c   : >> { %v592_v12 = vpop.xlane.xlu1 %591 }
 0x43d   : >> { %v593_v13 = vrot.slane %v592_v12, 4 }
 0x43f   : >> { %v594_v14 = vadd.f32 %v593_v13, %v592_v12 }
 0x440   : >> { %v612_v15 = vpop.xlane.xlu1 %611 }
 0x441   : >> { %v595_v16 = vrot.slane %v594_v14, 2  ;;  %v613_v17 = vrot.slane %v612_v15, 4 }
 0x443   : >> { %v614_v18 = vadd.f32 %v613_v17, %v612_v15  ;;  %v596_v19 = vadd.f32 %v595_v16, %v594_v14 }
 0x445   : >> { %v615_v20 = vrot.slane %v614_v18, 2  ;;  %v597_v21 = vrot.slane %v596_v19, 1 }
 0x447   : >> { %v616_v22 = vadd.f32 %v615_v20, %v614_v18  ;;  %v598_v23 = vadd.f32 %v597_v21, %v596_v19 }
 0x449   : >> { %783 = vpush %v598_v23  ;;  %v617_v24 = vrot.slane %v616_v22, 1 }
 0x44b   : >> { %v618_v25 = vadd.f32 %v617_v24, %v616_v22 }
 0x44d   : >> { %785 = vpush %v618_v25 }
 0x47a   : >> { %s784_s14 = spop %783 }
 0x47b   : >> { %v600_v26 = vstv %s784_s14 }
 0x47c   : >> { %v601_v27 = vadd.f32 %v998_v46, %v600_v26   ;;  %369 = sbr.rel (!%p367_p6) target bundleno = 460 (0x1cc), region = 86 }
 0x47e   : >> { %s786_s20 = spop %785  ;;  %v1257_v46 = vmov %v601_v27 }
 0x47f   : >> { %v620_v28 = vstv %s786_s20 }
 0x480   : >> { %v621_v29 = vadd.f32 %v994_v45, %v620_v28  }
 0x482   : >> { %v1256_v45 = vmov %v621_v29  ;;  %v624_v30 = vsel (%p367_p6), %vm623_vm7, %v621_v29, 0.0 }
 0x483   : > { %v625_v32 = vsel %vm622_vm6, %v601_v27, %v624_v30 }
 0x484   : > { %626 = vst [vmem:[%s1157_s12] sm:$0x1] %v625_v32 }
 0x485   : > { %925 = shalt.err (!%p922_p8)
}
 0x486   : > { %s926_s27 = scalar_lea.hbm %s1195_s30, 16  ;;  %s930_s11 = scalar_lea.hbm %s1245_s4, 32 }
 0x487   : > { %p927_p11 = scmp.ne.s32.totalorder %s1195_s30, %s926_s27  ;;  %p931_p0 = scmp.lt.u32.totalorder %s1195_s30, %s1245_s4 }
 0x488   : > { %p932_p5 = scmp.lt.u32.totalorder %s930_s11, %s926_s27  ;;  %p934_p9 = scmp.lt.u32.totalorder %s926_s27, %s1195_s30 }
 0x489   : > { %p928_p13 = pnand %p927_p11, %p1258_p10 }
 0x48a   : > { %p933_p6 = por %p932_p5, %p931_p0 }
 0x48b   : > { %p929_p1 = pneg %p928_p13 }
 0x48c   : > { %p935_p12 = por %p934_p9, %p933_p6 }
 0x48e   : > { %p936_p2 = pnand %p935_p12, %p929_p1 }
 0x490   : > { %939 = shalt.err (!%p936_p2)
}
 0x491   : > { %791 = dma.vmem_to_hbm [thread:$0]  (%p1258_p10), %s1198_s5, 16, %s1195_s30, %s628_s6  }
 0x492 PF: > { %p803_p3 = scmp.ge.s32.totalorder %s990_s18, 2  ;;  %s652_s14 = sand.u32 1, %s978_s15  }
 0x493   : > { %p1259_p4 = scmp.ne.s32.totalorder %s1250_s26, 0  ;;  %s653_s20 = scalar_lea.sflag [#allocation4], %s652_s14 }
 0x495   : > { %p798_p7 = pnand %p803_p3, %p1259_p4 }
 0x497   : > { %973 = dma.done.wait (!%p798_p7), %s653_s20, 16  }
 0x498   : > { %975 = vsyncadd (!%p798_p7), %s653_s20, 4294967280  ;;  %p15_p8 = scmp.ge.s32.totalorder %s1067_s21, 4   ;;  %s1260_s15 = smov %s982_s16 }
 0x499   : > { %s1261_s16 = smov %s986_s17  ;;  %s1262_s17 = smov %s1078_s24 }
 0x49a   : > { %s1263_s18 = smov %s1067_s21  ;;  %17 = sbr.rel (!%p15_p8) target bundleno = 4 (0x4), region = 97 }
 0x4a1   :  { %657 = vsyncpa [#allocation3], 1 }
 0x4a2   :  { %659 = vsyncpa [#allocation3 + $0x1], 1 }
 0x4a3   :  { %660 = vsyncpa [#allocation4], 1 }
 0x4a4   :  { %662 = vsyncpa [#allocation4 + $0x1], 1 }

</bundles_post_ra>
